<compile_context>
chip_gen: v7x
topology: tpu7x:2x2x1
jax: 0.10.0
libtpu: 0.0.40
codegen_flags: <defaults>
</compile_context>

<pallas_src>
import jax
import jax.numpy as jnp
from jax.experimental import pallas as pl
from jax.experimental.pallas import tpu as pltpu


def _round_up(x, m):
    return ((x + m - 1) // m) * m


def _cdiv(a, b):
    return -(-a // b)


def fraudnet_kernel(x_ref, w1_ref, b1_ref, w2_ref, b2_ref, w3_ref, b3_ref, o_ref):
    # x tile arrives in the caller's f32; cast to bf16 here (no extra HBM pass outside).
    x_bf16 = x_ref[...].astype(jnp.bfloat16)                       # (TILE_B, in)

    # Layer 1 (feature-major): (64, in) . (TILE_B, in)^T -> (64, TILE_B).
    # Only the bf16 x tile needs an internal transpose/relayout (XLU, overlaps MXU).
    h1 = jax.lax.dot_general(
        w1_ref[...], x_bf16,
        dimension_numbers=(((1,), (1,)), ((), ())),
        preferred_element_type=jnp.float32)
    h1 = jnp.maximum(h1 + b1_ref[...], 0.0)                        # (64, TILE_B) f32

    # Layer 2: (32, 64) @ (64, TILE_B) -> (32, TILE_B). Plain MM, no relayout, N=TILE_B.
    h2 = jnp.dot(w2_ref[...], h1.astype(jnp.bfloat16),
                 preferred_element_type=jnp.float32)
    h2 = jnp.maximum(h2 + b2_ref[...], 0.0)                        # (32, TILE_B) f32

    # Layer 3: (1, 32) @ (32, TILE_B) -> (1, TILE_B). Lane-dense output slab.
    logits = jnp.dot(w3_ref[...], h2.astype(jnp.bfloat16),
                     preferred_element_type=jnp.float32)
    o_ref[...] = jax.nn.sigmoid(logits + b3_ref[...])


def _max_tile_rows(in_features, budget_bytes=40 * 1024 * 1024):
    """Largest 128-multiple tile whose estimated VMEM footprint fits the budget.

    The budget is chosen to leave headroom even on v7x (64 MiB physical VMEM).
    """
    in_pad = _round_up(in_features, 128)
    per_row = (2 * 4 * in_pad        # x f32 tile (lane-padded), double-buffered
               + 2 * in_pad          # in-kernel bf16 copy of the x tile
               + 2 * in_features     # transposed bf16 x feeding the MXU
               + (4 + 2) * 64        # h1 f32 + bf16 copy (feature-major: no lane pad)
               + (4 + 2) * 32        # h2 f32 + bf16 copy
               + 2 * 4)              # (1, TILE_B) f32 output, double-buffered
    return max(128, (budget_bytes // per_row) // 128 * 128)


def _fraudnet_call(x_block, params, tile_rows, num_tiles, in_features):
    """One pallas_call over `num_tiles` full tiles of `tile_rows` rows of x_block."""
    w1, b1, w2, b2, w3, b3 = params
    rows = tile_rows * num_tiles

    flops = 2 * rows * (in_features * 64 + 64 * 32 + 32)
    bytes_accessed = (rows * in_features * 4
                      + sum(int(p.size) * p.dtype.itemsize for p in params)
                      + rows * 4)
    cost = pl.CostEstimate(flops=flops, transcendentals=rows,
                           bytes_accessed=bytes_accessed)

    # Weights/biases: full-array blocks with constant index_map -> DMA'd once and kept
    # VMEM-resident across all batch tiles.
    def resident(a):
        return pl.BlockSpec(a.shape, lambda i: (0,) * a.ndim)

    return pl.pallas_call(
        fraudnet_kernel,
        out_shape=jax.ShapeDtypeStruct((1, rows), jnp.float32),
        grid=(num_tiles,),
        in_specs=[
            pl.BlockSpec((tile_rows, in_features), lambda i: (i, 0)),  # x: batch-tiled
            resident(w1), resident(b1),
            resident(w2), resident(b2),
            resident(w3), resident(b3),
        ],
        out_specs=pl.BlockSpec((1, tile_rows), lambda i: (0, i)),  # lane-dense output slab
        compiler_params=pltpu.CompilerParams(
            dimension_semantics=("parallel",),          # shard batch tiles across TCs
            vmem_limit_bytes=64 * 1024 * 1024,          # allow the larger tiles
        ),
        cost_estimate=cost,
    )(x_block, w1, b1, w2, b2, w3, b3)


def fraudnet_forward(x, params, tile_b=16384):
    """x: (batch, input_size) float32. Returns (batch, 1) float32 probabilities."""
    batch, in_features = x.shape

    # Tile sizing: big tiles (amortize per-grid-step overhead), capped by a VMEM budget,
    # multiple of 128. Never round the whole batch up to a tile.
    tile_b = min(tile_b, _max_tile_rows(in_features))
    tile_b = max(128, (tile_b // 128) * 128)

    num_tiles = max(1, _cdiv(batch, tile_b))
    if num_tiles == 1 and batch > 256:
        num_tiles = 2                                  # keep both v7x TensorCores busy
    tile_eff = max(128, (_cdiv(batch, num_tiles) // 128) * 128)
    tile_eff = min(tile_eff, tile_b)

    n_main = batch // tile_eff                         # full tiles, straight out of x
    rem = batch - n_main * tile_eff                    # tail rows (< tile_eff)

    parts = []
    if n_main > 0:
        # Grid only covers the first n_main full tiles of x -> no padding, no copy.
        main = _fraudnet_call(x, params, tile_eff, n_main, in_features)
        parts.append(main[0])
    if rem > 0:
        # Pad only the small tail slice (<= tile_eff-1 rows) up to a 128-multiple.
        tile_tail = _round_up(rem, 128)
        x_tail = jnp.pad(x[n_main * tile_eff:], ((0, tile_tail - rem), (0, 0)))
        tail = _fraudnet_call(x_tail, params, tile_tail, 1, in_features)
        parts.append(tail[0, :rem])

    out = parts[0] if len(parts) == 1 else jnp.concatenate(parts)
    return out.reshape(batch, 1)


def init_params(key, input_size):
    # Weights kept in the natural PyTorch nn.Linear layout (out_features, in_features),
    # bf16 for the MXU (f32 accumulation in-kernel); biases stored as f32 column vectors
    # (out_features, 1) so they broadcast over the lane (batch) axis in the kernel.
    k1, k2, k3, k4, k5, k6 = jax.random.split(key, 6)
    w1 = (jax.random.normal(k1, (64, input_size), jnp.float32) * 0.1).astype(jnp.bfloat16)
    b1 = jax.random.normal(k2, (64, 1), jnp.float32) * 0.01
    w2 = (jax.random.normal(k3, (32, 64), jnp.float32) * 0.1).astype(jnp.bfloat16)
    b2 = jax.random.normal(k4, (32, 1), jnp.float32) * 0.01
    w3 = (jax.random.normal(k5, (1, 32), jnp.float32) * 0.1).astype(jnp.bfloat16)
    b3 = jax.random.normal(k6, (1, 1), jnp.float32) * 0.01
    return (w1, b1, w2, b2, w3, b3)


def fraudnet_ref_matched(x, params):
    # Pure-JAX reference with the same precision recipe (bf16 MXU operands, f32 accum).
    w1, b1, w2, b2, w3, b3 = params
    h1 = jnp.maximum(
        jnp.dot(x.astype(jnp.bfloat16), w1.T, preferred_element_type=jnp.float32) + b1.T, 0.0)
    h2 = jnp.maximum(
        jnp.dot(h1.astype(jnp.bfloat16), w2.T, preferred_element_type=jnp.float32) + b2.T, 0.0)
    logits = jnp.dot(h2.astype(jnp.bfloat16), w3.T, preferred_element_type=jnp.float32) + b3.T
    return jax.nn.sigmoid(logits)


def fraudnet_ref_f32(x, params):
    # Full-f32 reference (matches the original PyTorch model's numerics).
    w1, b1, w2, b2, w3, b3 = params
    h1 = jnp.maximum(x @ w1.astype(jnp.float32).T + b1.T, 0.0)
    h2 = jnp.maximum(h1 @ w2.astype(jnp.float32).T + b2.T, 0.0)
    return jax.nn.sigmoid(h2 @ w3.astype(jnp.float32).T + b3.T)


def _check(x, params, tile_b):
    out = jax.block_until_ready(fraudnet_forward(x, params, tile_b=tile_b))
    assert out.shape == (x.shape[0], 1)
    ref_m = fraudnet_ref_matched(x, params)
    ref_f = fraudnet_ref_f32(x, params)
    err_m = float(jnp.max(jnp.abs(out - ref_m)))
    err_f = float(jnp.max(jnp.abs(out - ref_f)))
    assert err_m < 1e-4, f"matched-precision max abs err {err_m}"
    assert err_f < 2e-2, f"f32-reference max abs err {err_f}"   # bf16 operands by design
    return out


if __name__ == "__main__":
    input_size = 30  # typical fraud-feature count; exercises a non-128-multiple last dim

    key = jax.random.PRNGKey(0)
    kx1, kx2, kp = jax.random.split(key, 3)
    params = init_params(kp, input_size)

    # Small batch: exercises the padded single-tile tail path.
    x_small = jax.random.normal(kx1, (8, input_size), jnp.float32)
    _check(x_small, params, tile_b=16384)

    # Larger, non-divisible batch with a small tile: exercises the multi-tile main
    # grid (full tiles, no padding) plus the tail call.
    x_big = jax.random.normal(kx2, (777, input_size), jnp.float32)
    _check(x_big, params, tile_b=256)

    print("KERNEL_OK")
</pallas_src>

<mosaic_0001>
module attributes {stable_mosaic.version = 11 : i64} {
  func.func @fraudnet_kernel(%arg0: i32, %arg1: memref<128x30xf32, #tpu.memory_space<vmem>>, %arg2: memref<64x30xbf16, #tpu.memory_space<vmem>>, %arg3: memref<64x1xf32, #tpu.memory_space<vmem>>, %arg4: memref<32x64xbf16, #tpu.memory_space<vmem>>, %arg5: memref<32x1xf32, #tpu.memory_space<vmem>>, %arg6: memref<1x32xbf16, #tpu.memory_space<vmem>>, %arg7: memref<1x1xf32, #tpu.memory_space<vmem>>, %arg8: memref<1x128xf32, #tpu.memory_space<vmem>>) attributes {dimension_semantics = [#tpu.dimension_semantics<parallel>], iteration_bounds = array<i64: 1>, scalar_prefetch = 0 : i64, scratch_operands = 0 : i64, tpu.core_type = #tpu.core_type<tc>, window_params = [{transform_indices = @transform_0, window_bounds = array<i64: 128, 30>}, {pipeline_mode = #tpu.pipeline_mode<synchronous>, transform_indices = @transform_1, window_bounds = array<i64: 64, 30>}, {pipeline_mode = #tpu.pipeline_mode<synchronous>, transform_indices = @transform_2, window_bounds = array<i64: 64, 1>}, {pipeline_mode = #tpu.pipeline_mode<synchronous>, transform_indices = @transform_3, window_bounds = array<i64: 32, 64>}, {pipeline_mode = #tpu.pipeline_mode<synchronous>, transform_indices = @transform_4, window_bounds = array<i64: 32, 1>}, {pipeline_mode = #tpu.pipeline_mode<synchronous>, transform_indices = @transform_5, window_bounds = array<i64: 1, 32>}, {pipeline_mode = #tpu.pipeline_mode<synchronous>, transform_indices = @transform_6, window_bounds = array<i64: 1, 1>}, {transform_indices = @transform_7, window_bounds = array<i64: 1, 128>}]} {
    %c0 = arith.constant 0 : index
    %c0_0 = arith.constant 0 : index
    %0 = vector.load %arg1[%c0, %c0_0] : memref<128x30xf32, #tpu.memory_space<vmem>>, vector<128x30xf32>
    %1 = arith.truncf %0 : vector<128x30xf32> to vector<128x30xbf16>
    %c0_1 = arith.constant 0 : index
    %c0_2 = arith.constant 0 : index
    %2 = vector.load %arg2[%c0_1, %c0_2] : memref<64x30xbf16, #tpu.memory_space<vmem>>, vector<64x30xbf16>
    %cst = arith.constant dense<0.000000e+00> : vector<64x128xf32>
    %3 = tpu.matmul %2, %1, %cst {dimension_numbers = #tpu.dot_dimension_numbers<[1], [1], [0], [0], [0, 0, 1, 0], [], []>} : vector<64x30xbf16>, vector<128x30xbf16>, vector<64x128xf32> -> vector<64x128xf32>
    %c0_3 = arith.constant 0 : index
    %c0_4 = arith.constant 0 : index
    %4 = vector.load %arg3[%c0_3, %c0_4] : memref<64x1xf32, #tpu.memory_space<vmem>>, vector<64x1xf32>
    %5 = vector.broadcast %4 : vector<64x1xf32> to vector<64x128xf32>
    %6 = arith.addf %3, %5 : vector<64x128xf32>
    %cst_5 = arith.constant 0.000000e+00 : f32
    %7 = vector.broadcast %cst_5 : f32 to vector<64x128xf32>
    %8 = arith.maximumf %6, %7 : vector<64x128xf32>
    %c0_6 = arith.constant 0 : index
    %c0_7 = arith.constant 0 : index
    %9 = vector.load %arg4[%c0_6, %c0_7] : memref<32x64xbf16, #tpu.memory_space<vmem>>, vector<32x64xbf16>
    %10 = arith.truncf %8 : vector<64x128xf32> to vector<64x128xbf16>
    %cst_8 = arith.constant dense<0.000000e+00> : vector<32x128xf32>
    %11 = tpu.matmul %9, %10, %cst_8 {dimension_numbers = #tpu.dot_dimension_numbers<[1], [0], [0], [1], [0, 0, 1, 1], [], []>} : vector<32x64xbf16>, vector<64x128xbf16>, vector<32x128xf32> -> vector<32x128xf32>
    %c0_9 = arith.constant 0 : index
    %c0_10 = arith.constant 0 : index
    %12 = vector.load %arg5[%c0_9, %c0_10] : memref<32x1xf32, #tpu.memory_space<vmem>>, vector<32x1xf32>
    %13 = vector.broadcast %12 : vector<32x1xf32> to vector<32x128xf32>
    %14 = arith.addf %11, %13 : vector<32x128xf32>
    %cst_11 = arith.constant 0.000000e+00 : f32
    %15 = vector.broadcast %cst_11 : f32 to vector<32x128xf32>
    %16 = arith.maximumf %14, %15 : vector<32x128xf32>
    %c0_12 = arith.constant 0 : index
    %c0_13 = arith.constant 0 : index
    %17 = vector.load %arg6[%c0_12, %c0_13] : memref<1x32xbf16, #tpu.memory_space<vmem>>, vector<1x32xbf16>
    %18 = arith.truncf %16 : vector<32x128xf32> to vector<32x128xbf16>
    %cst_14 = arith.constant dense<0.000000e+00> : vector<1x128xf32>
    %19 = tpu.matmul %17, %18, %cst_14 {dimension_numbers = #tpu.dot_dimension_numbers<[1], [0], [0], [1], [0, 0, 1, 1], [], []>} : vector<1x32xbf16>, vector<32x128xbf16>, vector<1x128xf32> -> vector<1x128xf32>
    %c0_15 = arith.constant 0 : index
    %c0_16 = arith.constant 0 : index
    %20 = vector.load %arg7[%c0_15, %c0_16] : memref<1x1xf32, #tpu.memory_space<vmem>>, vector<1x1xf32>
    %21 = vector.broadcast %20 : vector<1x1xf32> to vector<1x128xf32>
    %22 = arith.addf %19, %21 : vector<1x128xf32>
    %23 = arith.negf %22 : vector<1x128xf32>
    %24 = math.exp %23 : vector<1x128xf32>
    %cst_17 = arith.constant 1.000000e+00 : f32
    %25 = vector.broadcast %cst_17 : f32 to vector<1x128xf32>
    %26 = arith.addf %25, %24 : vector<1x128xf32>
    %27 = arith.divf %25, %26 : vector<1x128xf32>
    %c0_18 = arith.constant 0 : index
    %c0_19 = arith.constant 0 : index
    %28 = vector.load %arg8[%c0_18, %c0_19] : memref<1x128xf32, #tpu.memory_space<vmem>>, vector<1x128xf32>
    tpu.vector_store %arg8[%c0_18, %c0_19], %27 {strides = array<i32>} : memref<1x128xf32, #tpu.memory_space<vmem>>, vector<1x128xf32>,
    return
  }
  func.func @transform_0(%arg0: i32) -> (i32, i32) {
    %c0_i32 = arith.constant 0 : i32
    %c0_i32_0 = arith.constant 0 : i32
    return %arg0, %c0_i32 : i32, i32
  }
  func.func @transform_1(%arg0: i32) -> (i32, i32) {
    %c0_i32 = arith.constant 0 : i32
    %c0_i32_0 = arith.constant 0 : i32
    %c0_i32_1 = arith.constant 0 : i32
    return %c0_i32, %c0_i32_0 : i32, i32
  }
  func.func @transform_2(%arg0: i32) -> (i32, i32) {
    %c0_i32 = arith.constant 0 : i32
    %c0_i32_0 = arith.constant 0 : i32
    %c0_i32_1 = arith.constant 0 : i32
    return %c0_i32, %c0_i32_0 : i32, i32
  }
  func.func @transform_3(%arg0: i32) -> (i32, i32) {
    %c0_i32 = arith.constant 0 : i32
    %c0_i32_0 = arith.constant 0 : i32
    %c0_i32_1 = arith.constant 0 : i32
    return %c0_i32, %c0_i32_0 : i32, i32
  }
  func.func @transform_4(%arg0: i32) -> (i32, i32) {
    %c0_i32 = arith.constant 0 : i32
    %c0_i32_0 = arith.constant 0 : i32
    %c0_i32_1 = arith.constant 0 : i32
    return %c0_i32, %c0_i32_0 : i32, i32
  }
  func.func @transform_5(%arg0: i32) -> (i32, i32) {
    %c0_i32 = arith.constant 0 : i32
    %c0_i32_0 = arith.constant 0 : i32
    %c0_i32_1 = arith.constant 0 : i32
    return %c0_i32, %c0_i32_0 : i32, i32
  }
  func.func @transform_6(%arg0: i32) -> (i32, i32) {
    %c0_i32 = arith.constant 0 : i32
    %c0_i32_0 = arith.constant 0 : i32
    %c0_i32_1 = arith.constant 0 : i32
    return %c0_i32, %c0_i32_0 : i32, i32
  }
  func.func @transform_7(%arg0: i32) -> (i32, i32) {
    %c0_i32 = arith.constant 0 : i32
    %c0_i32_0 = arith.constant 0 : i32
    return %c0_i32, %arg0 : i32, i32
  }
}

</mosaic_0001>

<bundles_post_ra>
// kernel: tpu_custom_call.1
= control target key start
LH: loop header
LB: loop body
LE: loop exit
PB: predicated region body
PF: predicated region fallthrough
CT: control target
= control target key end

     0   :  { %s953_s0 = inlined_call_operand.hbm [shape: f32[128,30], index: 0, kind: input, shape index: {}]   ;;  %s954_s1 = inlined_call_operand.hbm [shape: bf16[64,30], index: 1, kind: input, shape index: {}]   ;;  %s955_s2 = inlined_call_operand.hbm [shape: f32[64,1], index: 2, kind: input, shape index: {}]   ;;  %s956_s3 = inlined_call_operand.hbm [shape: bf16[32,64], index: 3, kind: input, shape index: {}]   ;;  %s957_s4 = inlined_call_operand.hbm [shape: f32[32,1], index: 4, kind: input, shape index: {}]   ;;  %s958_s5 = inlined_call_operand.hbm [shape: bf16[1,32], index: 5, kind: input, shape index: {}]   ;;  %s959_s6 = inlined_call_operand.<no memory space> [shape: f32[1,1], index: 6, kind: input, shape index: {}]   ;;  %s960_s7 = inlined_call_operand.hbm [shape: f32[1,128], index: 7, kind: output, shape index: {}]  }
   0x1   :  { %v12_v0 = vstv %s959_s6 }
   0x2   :  { %13 = vst [vmem:[#allocation2] sm:$0x1] %v12_v0 }
   0x3   :  { %14 = vsyncpa [#allocation4], 0 }
   0x4   :  { %15 = vsyncpa [#allocation7], 0 }
   0x5   :  { %16 = vsyncpa [#allocation10], 0 }
   0x6   :  { %17 = vsyncpa [#allocation13], 0 }
   0x7   :  { %18 = vsyncpa [#allocation5], 0  ;;  %s781_s26 = smov [#allocation6]   ;;  %s617_s30 = scalar_lea.hbm %s954_s1, 512 }
   0x8   :  { %s36_s27 = sshll.u32 %s781_s26, 4  ;;  %p618_p0 = scmp.ne.s32.totalorder %s954_s1, %s617_s30  ;;  %s37_s27 = int_to_ptr.vmem [resolvable:$true] %s36_s27 }
   0x9   :  { %p621_p1 = scmp.lt.u32.totalorder %s617_s30, %s954_s1 }
   0xb   :  { %p623_p2 = pnand %p621_p1, %p618_p0 }
   0xd   :  { %626 = shalt.err (!%p623_p2)
}
   0xe   :  { %s627_s6 = scalar_lea.vmem %s37_s27, 512  ;;  %p632_p4 = scmp.lt.s32.totalorder %s37_s27, %s37_s27 }
   0xf   :  { %p628_p3 = scmp.ne.s32.totalorder %s37_s27, %s627_s6  ;;  %p633_p5 = scmp.lt.s32.totalorder %s627_s6, %s627_s6 }
  0x11   :  { %p634_p6 = por %p633_p5, %p632_p4 }
  0x13   :  { %p635_p7 = pnand %p634_p6, %p628_p3 }
  0x15   :  { %638 = shalt.err (!%p635_p7)
}
  0x16   :  { %s782_s12 = smov 64   ;;  %s783_s13 = smov 4  }
  0x17   :  { %42 = dma.hbm_to_vmem [thread:$0]  %s954_s1, 512, %s37_s27, [#allocation7], %s782_s12, %s782_s12, %s783_s13  }
  0x18   :  { %s784_s16 = smov [#allocation9]   ;;  %s785_s18 = smov [#allocation3]  }
  0x19   :  { %s60_s17 = sshll.u32 %s784_s16, 4  ;;  %s24_s19 = sshll.u32 %s785_s18, 4  ;;  %s61_s17 = int_to_ptr.vmem [resolvable:$true] %s60_s17  ;;  %s25_s19 = int_to_ptr.vmem [resolvable:$true] %s24_s19 }
  0x1a   :  { %s639_s22 = scalar_lea.hbm %s956_s3, 256 }
  0x1b   :  { %p640_p8 = scmp.ne.s32.totalorder %s956_s3, %s639_s22  ;;  %p643_p9 = scmp.lt.u32.totalorder %s639_s22, %s956_s3 }
  0x1d   :  { %p645_p10 = pnand %p643_p9, %p640_p8 }
  0x1f   :  { %648 = shalt.err (!%p645_p10)
}
  0x20   :  { %s649_s1 = scalar_lea.vmem %s61_s17, 256  ;;  %p654_p12 = scmp.lt.s32.totalorder %s61_s17, %s61_s17 }
  0x21   :  { %p650_p11 = scmp.ne.s32.totalorder %s61_s17, %s649_s1  ;;  %p655_p13 = scmp.lt.s32.totalorder %s649_s1, %s649_s1 }
  0x23   :  { %p656_p0 = por %p655_p13, %p654_p12 }
  0x25   :  { %p657_p1 = pnand %p656_p0, %p650_p11 }
  0x27   :  { %660 = shalt.err (!%p657_p1)
}
  0x28   :  { %66 = dma.hbm_to_vmem [thread:$0]  %s956_s3, 256, %s61_s17, [#allocation10], %s782_s12, %s782_s12, %s783_s13  }
  0x29   :  { %s661_s8 = scalar_lea.hbm %s953_s0, 2048 }
  0x2a   :  { %p662_p2 = scmp.ne.s32.totalorder %s953_s0, %s661_s8  ;;  %p665_p3 = scmp.lt.u32.totalorder %s661_s8, %s953_s0 }
  0x2c   :  { %p667_p4 = pnand %p665_p3, %p662_p2 }
  0x2e   :  { %670 = shalt.err (!%p667_p4)
}
  0x2f   :  { %s671_s14 = scalar_lea.vmem %s25_s19, 2048  ;;  %p676_p6 = scmp.lt.s32.totalorder %s25_s19, %s25_s19 }
  0x30   :  { %p672_p5 = scmp.ne.s32.totalorder %s25_s19, %s671_s14  ;;  %p677_p7 = scmp.lt.s32.totalorder %s671_s14, %s671_s14 }
  0x32   :  { %p678_p8 = por %p677_p7, %p676_p6 }
  0x34   :  { %p679_p9 = pnand %p678_p8, %p672_p5 }
  0x36   :  { %682 = shalt.err (!%p679_p9)
}
  0x37   :  { %s786_s3 = smov 128   ;;  %s787_s12 = smov 8  }
  0x38   :  { %30 = dma.hbm_to_vmem [thread:$0]  %s953_s0, 2048, %s25_s19, [#allocation4], %s786_s3, %s786_s3, %s787_s12  }
  0x39   :  { %s788_s16 = smov [#allocation8]   ;;  %s789_s18 = smov [#allocation11]  }
  0x3a   :  { %s48_s17 = sshll.u32 %s788_s16, 4  ;;  %s72_s20 = sshll.u32 %s789_s18, 4  ;;  %s49_s17 = int_to_ptr.vmem [resolvable:$true] %s48_s17  ;;  %s73_s20 = int_to_ptr.vmem [resolvable:$true] %s72_s20 }
  0x3b   :  { %s683_s23 = scalar_lea.hbm %s955_s2, 1024 }
  0x3c   :  { %p684_p10 = scmp.ne.s32.totalorder %s955_s2, %s683_s23  ;;  %p687_p11 = scmp.lt.u32.totalorder %s683_s23, %s955_s2 }
  0x3e   :  { %p689_p12 = pnand %p687_p11, %p684_p10 }
  0x40   :  { %692 = shalt.err (!%p689_p12)
}
  0x41   :  { %s693_s0 = scalar_lea.vmem %s49_s17, 1024  ;;  %p698_p0 = scmp.lt.s32.totalorder %s49_s17, %s49_s17 }
  0x42   :  { %p694_p13 = scmp.ne.s32.totalorder %s49_s17, %s693_s0  ;;  %p699_p1 = scmp.lt.s32.totalorder %s693_s0, %s693_s0 }
  0x44   :  { %p700_p2 = por %p699_p1, %p698_p0 }
  0x46   :  { %p701_p3 = pnand %p700_p2, %p694_p13 }
  0x48   :  { %704 = shalt.err (!%p701_p3)
}
  0x49   :  { %54 = dma.hbm_to_vmem [thread:$0]  %s955_s2, 1024, %s49_s17, [#allocation7], %s786_s3, %s786_s3, %s787_s12  }
  0x4a   :  { %s705_s30 = scalar_lea.hbm %s957_s4, 512 }
  0x4b   :  { %p706_p4 = scmp.ne.s32.totalorder %s957_s4, %s705_s30  ;;  %p709_p5 = scmp.lt.u32.totalorder %s705_s30, %s957_s4 }
  0x4d   :  { %p711_p6 = pnand %p709_p5, %p706_p4 }
  0x4f   :  { %714 = shalt.err (!%p711_p6)
}
  0x50   :  { %s715_s6 = scalar_lea.vmem %s73_s20, 512  ;;  %p720_p8 = scmp.lt.s32.totalorder %s73_s20, %s73_s20 }
  0x51   :  { %p716_p7 = scmp.ne.s32.totalorder %s73_s20, %s715_s6  ;;  %p721_p9 = scmp.lt.s32.totalorder %s715_s6, %s715_s6 }
  0x53   :  { %p722_p10 = por %p721_p9, %p720_p8 }
  0x55   :  { %p723_p11 = pnand %p722_p10, %p716_p7 }
  0x57   :  { %726 = shalt.err (!%p723_p11)
}
  0x58   :  { %78 = dma.hbm_to_vmem [thread:$0]  %s957_s4, 512, %s73_s20, [#allocation10], %s786_s3, %s786_s3, %s787_s12  }
  0x59   :  { %s790_s13 = smov [#allocation12]   ;;  %s727_s18 = scalar_lea.hbm %s958_s5, 16 }
  0x5a   :  { %s85_s15 = sshll.u32 %s790_s13, 4  ;;  %p728_p12 = scmp.ne.s32.totalorder %s958_s5, %s727_s18  ;;  %s86_s15 = int_to_ptr.vmem [resolvable:$true] %s85_s15 }
  0x5b   :  { %p731_p13 = scmp.lt.u32.totalorder %s727_s18, %s958_s5 }
  0x5d   :  { %p733_p0 = pnand %p731_p13, %p728_p12 }
  0x5f   :  { %736 = shalt.err (!%p733_p0)
}
  0x60   :  { %s737_s25 = scalar_lea.vmem %s86_s15, 16  ;;  %s741_s4 = scalar_lea.vmem %s86_s15, 32 }
  0x61   :  { %p738_p1 = scmp.ne.s32.totalorder %s86_s15, %s737_s25  ;;  %p742_p2 = scmp.lt.s32.totalorder %s86_s15, %s86_s15 }
  0x62   :  { %p743_p3 = scmp.lt.s32.totalorder %s741_s4, %s737_s25 }
  0x64   :  { %p744_p4 = por %p743_p3, %p742_p2 }
  0x66   :  { %p745_p5 = pnand %p744_p4, %p738_p1 }
  0x68   :  { %748 = shalt.err (!%p745_p5)
}
  0x69   :  { %88 = dma.hbm_to_vmem [thread:$0]  %s958_s5, 16, %s86_s15, [#allocation13]  }
  0x6a   :  { %771 = dma.done.wait [#allocation4], 2048  }
  0x6b   :  { %772 = vsyncadd [#allocation4], 4294965248 }
  0x6c   :  { %773 = dma.done.wait [#allocation7], 1536  }
  0x6d   :  { %774 = vsyncadd [#allocation7], 4294965760 }
  0x6e   :  { %775 = dma.done.wait [#allocation10], 768  }
  0x6f   :  { %776 = vsyncadd [#allocation10], 4294966528 }
  0x70   :  { %777 = dma.done.wait [#allocation13], 16  }
  0x71   :  { %778 = vsyncadd [#allocation13], 4294967280  ;;  %v791_v1 = vmov 0   ;;  %v110_v2 = vld [vmem:[#allocation3] sm:$0xff]  ;;  %v111_v3 = vld [vmem:[#allocation3 + $0x8] sm:$0xff]  ;;  %vm210_vm0 = vcmask 244736  }
  0x72   :  { %605 = vset.pattern.permute.xlu0 %v791_v1  ;;  %606 = vset.pattern.permute.xlu1 %v791_v1  ;;  %v112_v4 = vld [vmem:[#allocation3 + $0x10] sm:$0xff]  ;;  %v126_v5 = vpack.c.bf16 %v111_v3, %v110_v2  ;;  %v113_v6 = vld [vmem:[#allocation3 + $0x18] sm:$0xff]  ;;  %v114_v9 = vld [vmem:[#allocation3 + $0x20] sm:$0xff]  ;;  %vm362_vm1 = vcmask 523264   ;;  %vm793_vm2 = vmmov 0   ;;  %vm435_vm3 = vcmask 261120  }
  0x73   :  { %v127_v7 = vpack.c.bf16 %v113_v6, %v112_v4  ;;  %v115_v10 = vld [vmem:[#allocation3 + $0x28] sm:$0xff]  ;;  %v607_v11 = vld [vmem:[#allocation6] sm:$0xff]   ;;  %v144_v15 = vld [vmem:[#allocation8 + $0x10] sm:$0xff]  ;;  %s794_s5 = smov [#allocation14]  }
  0x74   :  { %583 = vmatprep.subr.msk.bf16.mxu0 %vm210_vm0, %v126_v5  ;;  %v224_v8 = vsel %vm210_vm0, %v126_v5, 0  ;;  %555 = vmatprep.mubr.msk.bf16.mxu0 %vm210_vm0, %v607_v11  ;;  %v128_v13 = vpack.c.bf16 %v115_v10, %v114_v9  ;;  %v142_v14 = vld [vmem:[#allocation8] sm:$0xff]  ;;  %v143_v16 = vld [vmem:[#allocation8 + $0x8] sm:$0xff]  ;;  %v145_v17 = vld [vmem:[#allocation8 + $0x18] sm:$0xff]  ;;  %s492_s20 = sshll.u32 %s794_s5, 4  ;;  %s493_s20 = int_to_ptr.vmem [resolvable:$true] %s492_s20 }
  0x75   :  { %540 = vmatpush3.bf16.xpose.msra.mxu0 %v224_v8  ;;  %v227_v12 = vsel %vm210_vm0, %v127_v7, 0  ;;  %152 = vperm.xlu0 %605, %v142_v14   ;;  %v116_v18 = vld [vmem:[#allocation3 + $0x30] sm:$0xff]  ;;  %v117_v19 = vld [vmem:[#allocation3 + $0x38] sm:$0xff]  ;;  %v146_v20 = vld [vmem:[#allocation8 + $0x20] sm:$0xff]  ;;  %s749_s26 = scalar_lea.vmem %s493_s20, 16  ;;  %s753_s1 = scalar_lea.vmem %s493_s20, 32 }
  0x76   :  { %584 = vmatprep.subr.msk.bf16.mxu0 %vm210_vm0, %v127_v7  ;;  %162 = vperm.xlu1 %606, %v144_v15   ;;  %v147_v21 = vld [vmem:[#allocation8 + $0x28] sm:$0xff]  ;;  %v230_v22 = vsel %vm210_vm0, %v128_v13, 0  ;;  %v129_v23 = vpack.c.bf16 %v117_v19, %v116_v18  ;;  %v148_v24 = vld [vmem:[#allocation8 + $0x30] sm:$0xff]  ;;  %v149_v25 = vld [vmem:[#allocation8 + $0x38] sm:$0xff]  ;;  %p750_p6 = scmp.ne.s32.totalorder %s493_s20, %s749_s26  ;;  %p754_p7 = scmp.lt.s32.totalorder %s493_s20, %s493_s20 }
  0x77   :  { %v118_v26 = vld [vmem:[#allocation3 + $0x40] sm:$0xff]  ;;  %v119_v27 = vld [vmem:[#allocation3 + $0x48] sm:$0xff]  ;;  %v328_v28 = vld [vmem:[#allocation11] sm:$0xff]  ;;  %p755_p8 = scmp.lt.s32.totalorder %s753_s1, %s749_s26 }
  0x78   :  { %v329_v29 = vld [vmem:[#allocation11 + $0x8] sm:$0xff]  ;;  %v233_v30 = vsel %vm210_vm0, %v129_v23, 0  ;;  %v130_v31 = vpack.c.bf16 %v119_v27, %v118_v26  ;;  %v330_v32 = vld [vmem:[#allocation11 + $0x10] sm:$0xff]  ;;  %v331_v33 = vld [vmem:[#allocation11 + $0x18] sm:$0xff] }
  0x79   :  { %157 = vperm.xlu0 %605, %v143_v16   ;;  %v120_v34 = vld [vmem:[#allocation3 + $0x50] sm:$0xff]  ;;  %v121_v35 = vld [vmem:[#allocation3 + $0x58] sm:$0xff]  ;;  %v122_v39 = vld [vmem:[#allocation3 + $0x60] sm:$0xff]  ;;  %p756_p9 = por %p755_p8, %p754_p7 }
  0x7a   :  { %167 = vperm.xlu1 %606, %v145_v17   ;;  %v425_v36 = vld [vmem:[#allocation2] sm:$0x1]  ;;  %v236_v37 = vsel %vm210_vm0, %v130_v31, 0  ;;  %v131_v38 = vpack.c.bf16 %v121_v35, %v120_v34  ;;  %v123_v40 = vld [vmem:[#allocation3 + $0x68] sm:$0xff]  ;;  %v124_v43 = vld [vmem:[#allocation3 + $0x70] sm:$0xff] }
  0x7b   :  { %v132_v42 = vpack.c.bf16 %v123_v40, %v122_v39  ;;  %v125_v44 = vld [vmem:[#allocation3 + $0x78] sm:$0xff]  ;;  %v608_v48 = vld [vmem:[#allocation6 + $0x8] sm:$0xff]   ;;  %v609_v49 = vld [vmem:[#allocation6 + $0x10] sm:$0xff]   ;;  %p757_p10 = pnand %p756_p9, %p750_p6 }
  0x7c   :  { %v239_v41 = vsel %vm210_vm0, %v131_v38, 0  ;;  %v133_v46 = vpack.c.bf16 %v125_v44, %v124_v43  ;;  %v610_v50 = vld [vmem:[#allocation6 + $0x18] sm:$0xff]   ;;  %v611_v51 = vld [vmem:[#allocation9] sm:$0xff]   ;;  %v422_v44 = vld [vmem:[#allocation12] sm:$0x1] }
  0x7d   :  { %542 = vmatpush3.bf16.xpose.msra.mxu0 %v227_v12  ;;  %172 = vperm.xlu0 %605, %v146_v20   ;;  %v242_v45 = vsel %vm210_vm0, %v132_v42, 0 }
  0x7e   :  { %585 = vmatprep.subr.msk.bf16.mxu0 %vm210_vm0, %v128_v13  ;;  %177 = vperm.xlu1 %606, %v147_v21   ;;  %v245_v47 = vsel %vm210_vm0, %v133_v46, 0 }
  0x7f   :  { %571 = vmatprep.mubr.msk.bf16.mxu1 %vm362_vm1, %v611_v51 }
  0x81   :  { %182 = vperm.xlu0 %605, %v148_v24   ;;  %v612_v24 = vld [vmem:[#allocation9 + $0x8] sm:$0xff]  }
  0x82   :  { %187 = vperm.xlu1 %606, %v149_v25   ;;  %v792_v25 = vmov 0.0  }
  0x85   :  { %544 = vmatpush3.bf16.xpose.msra.mxu0 %v230_v22  ;;  %334 = vperm.xlu0 %605, %v328_v28  }
  0x86   :  { %586 = vmatprep.subr.msk.bf16.mxu0 %vm210_vm0, %v129_v23  ;;  %339 = vperm.xlu1 %606, %v329_v29  }
  0x89   :  { %344 = vperm.xlu0 %605, %v330_v32  }
  0x8a   :  { %349 = vperm.xlu1 %606, %v331_v33  }
  0x8d   :  { %546 = vmatpush3.bf16.xpose.msra.mxu0 %v233_v30  ;;  %428 = vperm.xlu0 %605, %v425_v36  }
  0x8e   :  { %587 = vmatprep.subr.msk.bf16.mxu0 %vm210_vm0, %v130_v31 }
  0x95   :  { %548 = vmatpush3.bf16.xpose.msra.mxu0 %v236_v37 }
  0x96   :  { %588 = vmatprep.subr.msk.bf16.mxu0 %vm210_vm0, %v131_v38 }
  0x9d   :  { %550 = vmatpush3.bf16.xpose.msra.mxu0 %v239_v41 }
  0x9e   :  { %589 = vmatprep.subr.msk.bf16.mxu0 %vm210_vm0, %v132_v42 }
  0xa5   :  { %552 = vmatpush3.bf16.xpose.msra.mxu0 %v242_v45  ;;  %v431_v45 = vlaneseq }
  0xa6   :  { %590 = vmatprep.subr.msk.bf16.mxu0 %vm210_vm0, %v133_v46 }
  0xa7   :  { %v432_v46 = vshrl.u32 %v431_v45, 7 }
  0xad   :  { %554 = vmatpush3.bf16.xpose.msra.mxu0 %v245_v47  ;;  %v433_v47 = vsub.s32 0, %v432_v46 }
  0xb4   :  { %556 = vmatmul.mubr.msk.bf16.vlgmr.msra.gmra.mrb[0].mxu0 %vm210_vm0, %v608_v48 }
  0xb5   :  { %559 = vmatprep.mubr.msk.bf16.mxu0 %vm210_vm0, %v609_v49 }
  0xbc   :  { %560 = vmatmul.mubr.msk.bf16.gmra.mrb[4].mxu0 %vm210_vm0, %v610_v50 }
  0xf4   :  { %v153_v52 = vpop.permute.xlu0 %152 }
  0xf5   :  { %v163_v53 = vpop.permute.xlu1 %162 }
  0xf8   :  { %v158_v54 = vpop.permute.xlu0 %157 }
  0xf9   :  { %v168_v55 = vpop.permute.xlu1 %167 }
  0xfc   :  { %v173_v59 = vpop.permute.xlu0 %172 }
  0xfd   :  { %v178_v0 = vpop.permute.xlu1 %177 }
 0x100   :  { %v183_v7 = vpop.permute.xlu0 %182 }
 0x101   :  { %v188_v12 = vpop.permute.xlu1 %187 }
 0x104   :  { %v335_v26 = vpop.permute.xlu0 %334 }
 0x105   :  { %v340_v27 = vpop.permute.xlu1 %339 }
 0x108   :  { %v345_v28 = vpop.permute.xlu0 %344 }
 0x109   :  { %v350_v32 = vpop.permute.xlu1 %349 }
 0x10c   :  { %v429_v48 = vpop.permute.xlu0 %428 }
 0x10d   :  { %v434_v49 = vrot.slane %v429_v48, %v433_v47 }
 0x187   :  { %v557_v56 = vpop.f32.mrb[0].mxu0 }
 0x188   :  { %v290_v57 = vadd.f32 %v557_v56, %v163_v53  ;;  %v281_v58 = vpop.f32.mrb[1].mxu0 }
 0x189   :  { %v282_v60 = vadd.f32 %v281_v58, %v153_v52  ;;  %v558_v61 = vpop.f32.mrb[2].mxu0 }
 0x18a   :  { %v293_v62 = vadd.f32 %v558_v61, %v168_v55  ;;  %v284_v63 = vpop.f32.mrb[3].mxu0  ;;  %v314_v2 = vmax.f32 %v290_v57, 0.0 }
 0x18b   :  { %v285_v1 = vadd.f32 %v284_v63, %v158_v54  ;;  %v312_v4 = vmax.f32 %v282_v60, 0.0 }
 0x18c   :  { %v315_v3 = vmax.f32 %v293_v62, 0.0 }
 0x18d   :  { %v313_v5 = vmax.f32 %v285_v1, 0.0 }
 0x18e   :  { %v325_v6 = vpack.c.bf16 %v315_v3, %v314_v2 }
 0x18f   :  { %v561_v8 = vpop.f32.mrb[4].mxu0  ;;  %v324_v9 = vpack.c.bf16 %v313_v5, %v312_v4 }
 0x190   :  { %v306_v10 = vadd.f32 %v561_v8, %v183_v7  ;;  %v297_v11 = vpop.f32.mrb[5].mxu0 }
 0x191   :  { %v298_v13 = vadd.f32 %v297_v11, %v173_v59  ;;  %v562_v14 = vpop.f32.mrb[6].mxu0  ;;  %563 = vmatprep.subr.bf16.mxu1 %v324_v9 }
 0x192   :  { %v309_v15 = vadd.f32 %v562_v14, %v188_v12  ;;  %v300_v16 = vpop.f32.mrb[7].mxu0  ;;  %564 = vmatpush3.bf16.msra.mxu1 %v324_v9  ;;  %v318_v18 = vmax.f32 %v306_v10, 0.0 }
 0x193   :  { %v301_v17 = vadd.f32 %v300_v16, %v178_v0  ;;  %565 = vmatprep.subr.bf16.mxu1 %v325_v6  ;;  %v316_v20 = vmax.f32 %v298_v13, 0.0 }
 0x194   :  { %v319_v19 = vmax.f32 %v309_v15, 0.0 }
 0x195   :  { %v317_v21 = vmax.f32 %v301_v17, 0.0 }
 0x196   :  { %v327_v22 = vpack.c.bf16 %v319_v19, %v318_v18  ;;  %566 = vmatpush3.bf16.msra.mxu1 %v325_v6 }
 0x197   :  { %v326_v23 = vpack.c.bf16 %v317_v21, %v316_v20 }
 0x199   :  { %567 = vmatprep.subr.bf16.mxu1 %v326_v23 }
 0x19a   :  { %568 = vmatpush3.bf16.msra.mxu1 %v326_v23 }
 0x19b   :  { %569 = vmatprep.subr.bf16.mxu1 %v327_v22 }
 0x19e   :  { %570 = vmatpush3.bf16.msra.mxu1 %v327_v22 }
 0x19f   :  { %575 = vmatprep.subr.bf16.mxu1 %v792_v25 }
 0x1a1   :  { %572 = vmatmul.mubr.msk.bf16.vlgmr.msra.gmra.mrb[0].mxu1 %vm362_vm1, %v612_v24 }
 0x1a2   :  { %579 = vmatprep.mubr.msk.bf16.mxu1 %vm793_vm2, %v792_v25 }
 0x274   :  { %v573_v29 = vpop.f32.mrb[0].mxu1 }
 0x275   :  { %v412_v30 = vadd.f32 %v573_v29, %v345_v28  ;;  %v403_v31 = vpop.f32.mrb[1].mxu1 }
 0x276   :  { %v404_v33 = vadd.f32 %v403_v31, %v335_v26  ;;  %v574_v34 = vpop.f32.mrb[2].mxu1 }
 0x277   :  { %v415_v35 = vadd.f32 %v574_v34, %v350_v32  ;;  %v406_v36 = vpop.f32.mrb[3].mxu1  ;;  %v420_v38 = vmax.f32 %v412_v30, 0.0 }
 0x278   :  { %v407_v37 = vadd.f32 %v406_v36, %v340_v27  ;;  %v418_v40 = vmax.f32 %v404_v33, 0.0 }
 0x279   :  { %v421_v39 = vmax.f32 %v415_v35, 0.0 }
 0x27a   :  { %v419_v41 = vmax.f32 %v407_v37, 0.0 }
 0x27b   :  { %v424_v42 = vpack.c.bf16 %v421_v39, %v420_v38 }
 0x27c   :  { %v423_v43 = vpack.c.bf16 %v419_v41, %v418_v40 }
 0x27e   :  { %576 = vmatpush3.bf16.msra.mxu1 %v423_v43 }
 0x27f   :  { %577 = vmatprep.subr.bf16.mxu1 %v792_v25 }
 0x282   :  { %578 = vmatpush3.bf16.msra.mxu1 %v424_v42 }
 0x285   :  { %580 = vmatmul.mubr.msk.bf16.vlgmr.msra.gmra.mrb[4].mxu1 %vm435_vm3, %v422_v44 }
 0x358   :  { %v473_v50 = vpop.f32.mrb[4].mxu1 }
 0x359   :  { %v474_v51 = vadd.f32 %v473_v50, %v434_v49  ;;  %v581_v52 = vpop.f32.mrb[5].mxu1 }
 0x35a   :  { %v476_v53 = vpop.f32.mrb[6].mxu1 }
 0x35b   :  { %v517_v54 = vmul.f32 -1.442695, %v474_v51  ;;  %v582_v55 = vpop.f32.mrb[7].mxu1 }
 0x35d   :  { %613 = vpow2.f32 %v517_v54 }
 0x367   :  { %v614_v56 = vpop.eup %613 }
 0x368   :  { %v482_v57 = vadd.f32 1.0, %v614_v56 }
 0x36a   :  { %615 = vrcp.f32 %v482_v57 }
 0x374   :  { %v616_v58 = vpop.eup %615 }
 0x375   :  { %485 = vst [vmem:[#allocation14] sm:$0x1] %v616_v58 }
 0x376   :  { %760 = shalt.err (!%p757_p10)
}
 0x377   :  { %s761_s27 = scalar_lea.hbm %s960_s7, 16 }
 0x378   :  { %p762_p11 = scmp.ne.s32.totalorder %s960_s7, %s761_s27  ;;  %p765_p12 = scmp.lt.u32.totalorder %s761_s27, %s960_s7 }
 0x37a   :  { %p767_p13 = pnand %p765_p12, %p762_p11 }
 0x37c   :  { %770 = shalt.err (!%p767_p13)
}
 0x37d   :  { %495 = dma.vmem_to_hbm [thread:$0]  %s493_s20, 16, %s960_s7, [#allocation5]  }
 0x37e   :  { %779 = dma.done.wait [#allocation5], 16  }
 0x37f   :  { %780 = vsyncadd [#allocation5], 4294967280 }
 0x380   :  { %499 = vsyncpa [#allocation4], 1 }
 0x381   :  { %500 = vsyncpa [#allocation7], 1 }
 0x382   :  { %501 = vsyncpa [#allocation10], 1 }
 0x383   :  { %502 = vsyncpa [#allocation13], 1 }
 0x384   :  { %503 = vsyncpa [#allocation5], 1 }

</bundles_post_ra>
